<compile_context>
chip_gen: v7x
topology: tpu7x:2x2x1
jax: 0.10.0
libtpu: 0.0.40
codegen_flags: <defaults>
</compile_context>

<pallas_src>
import functools

import jax
import jax.numpy as jnp
from jax.experimental import pallas as pl
from jax.experimental.pallas import tpu as pltpu


def _graph_agg_kernel(x_ref, w_ref, b_ref, o_ref, *, n_nodes, n_out, apply_tanh):
    # x_ref: (TB*N, F)  input rows (batch*node merged into the matmul M dim)
    # w_ref: (F, O2) bf16  -- fused [W_sig | 2*W_tanh | 0-pad], O2 = round_up(2*O, 128)
    # b_ref: (1, O2) f32   -- fused [b_sig | 2*b_tanh | 0]
    # o_ref: (TB, O)
    tb = o_ref.shape[0]

    x = x_ref[...].astype(jnp.bfloat16)
    # One fused MXU call per grid step; f32 accumulation.
    h = jnp.dot(x, w_ref[...], preferred_element_type=jnp.float32) + b_ref[...]

    # Single EUP pass over O2 lanes; recover the tanh branch with the exact identity
    # tanh(z) = 2*sigmoid(2z) - 1 (the tanh weights/bias were pre-scaled by 2).
    s = jax.nn.sigmoid(h)                           # (TB*N, O2), f32
    i = s[:, :n_out]                                # sigmoid branch, (TB*N, O)
    j = 2.0 * s[:, n_out:2 * n_out] - 1.0           # tanh branch,    (TB*N, O)

    # Reduce over the node axis. Layout-free when N % 8 == 0 (demo: N = 8).
    # TODO(synk): for N % 8 != 0, replace the reshape with an MXU aggregation matmul.
    prod = (i * j).reshape(tb, n_nodes, n_out)
    out = jnp.sum(prod, axis=1)                     # (TB, O), f32

    if apply_tanh:
        out = jnp.tanh(out)

    o_ref[...] = out.astype(o_ref.dtype)


def graph_aggregation(x, w_sig, b_sig, w_tanh, b_tanh, *,
                      activation_tanh=True, tb=None):
    """x: (B, N, F); w_*: (F, O); b_*: (O,). Returns (B, O)."""
    B, N, F = x.shape
    O = w_sig.shape[1]
    out_dtype = x.dtype

    # Packed fused-weight width: both branches inside round_up(2*O, 128) lanes.
    o2 = -(-(2 * O) // 128) * 128

    # --- batch tile heuristic: amortize the ~0.35us/step pipeline overhead ---------
    if tb is None:
        target_rows = 1024
        tb = max(1, -(-target_rows // N))
        # VMEM budget per step, counting the f32 intermediates (not just x):
        #   x (double-buffered, f32 in HBM) + h,sigmoid(h) (O2 lanes f32) + i,j,prod (O lanes f32)
        bytes_per_row = 2 * F * 4 + 2 * o2 * 4 + 3 * O * 4
        budget = 8 * 1024 * 1024          # safe under the 32 MiB limit on every generation
        max_rows = max(N, budget // max(1, bytes_per_row))
        tb = min(tb, max(1, max_rows // N))
        tb = min(tb, B)                   # never tile beyond the real batch
    if tb < B:
        tb = max(8, (tb // 8) * 8)        # sublane-aligned blocks when the batch is tiled
    b_pad = -(-B // tb) * tb

    # --- fuse the two linears: [W_sig | 2*W_tanh | 0], tanh recovered via 2*sigmoid-1 ---
    w_cat = jnp.zeros((F, o2), jnp.float32)
    w_cat = w_cat.at[:, :O].set(w_sig.astype(jnp.float32))
    w_cat = w_cat.at[:, O:2 * O].set(2.0 * w_tanh.astype(jnp.float32))
    w_cat = w_cat.astype(jnp.bfloat16)                       # (F, O2)

    b_cat = jnp.zeros((1, o2), jnp.float32)
    b_cat = b_cat.at[0, :O].set(b_sig.astype(jnp.float32))
    b_cat = b_cat.at[0, O:2 * O].set(2.0 * b_tanh.astype(jnp.float32))

    # --- pre-flatten x to (B*N, F); pad only the batch axis (never N) ---------------
    x2 = x.reshape(B * N, F)
    if b_pad != B:
        x2 = jnp.pad(x2, ((0, (b_pad - B) * N), (0, 0)))

    kernel = functools.partial(_graph_agg_kernel, n_nodes=N, n_out=O,
                               apply_tanh=activation_tanh)

    out = pl.pallas_call(
        kernel,
        out_shape=jax.ShapeDtypeStruct((b_pad, O), out_dtype),
        grid_spec=pltpu.PrefetchScalarGridSpec(
            num_scalar_prefetch=0,
            grid=(b_pad // tb,),
            in_specs=[
                pl.BlockSpec((tb * N, F), lambda b: (b, 0)),    # x  (flattened rows)
                pl.BlockSpec((F, o2), lambda b: (0, 0)),        # fused W (bf16)
                pl.BlockSpec((1, o2), lambda b: (0, 0)),        # fused bias (f32)
            ],
            out_specs=pl.BlockSpec((tb, O), lambda b: (b, 0)),
        ),
        compiler_params=pltpu.CompilerParams(
            dimension_semantics=("parallel",),
            vmem_limit_bytes=32 * 1024 * 1024),
    )(x2, w_cat, b_cat)

    return out[:B, :O]


def _init_linear(key, fan_in, fan_out, dtype=jnp.float32):
    # Mimic torch.nn.Linear default init: U(-1/sqrt(fan_in), 1/sqrt(fan_in)).
    kw, kb = jax.random.split(key)
    bound = 1.0 / (fan_in ** 0.5)
    w = jax.random.uniform(kw, (fan_in, fan_out), dtype, -bound, bound)
    b = jax.random.uniform(kb, (fan_out,), dtype, -bound, bound)
    return w, b


def _reference_f32(x, w_sig, b_sig, w_tanh, b_tanh, activation_tanh=True):
    i = jax.nn.sigmoid(x @ w_sig + b_sig)
    j = jnp.tanh(x @ w_tanh + b_tanh)
    out = jnp.sum(i * j, axis=1)
    if activation_tanh:
        out = jnp.tanh(out)
    return out


def _reference_bf16(x, w_sig, b_sig, w_tanh, b_tanh, activation_tanh=True):
    # Mirrors the kernel's precision: bf16 matmul operands, f32 accumulate/activations.
    xb = x.astype(jnp.bfloat16)
    hs = jnp.dot(xb, w_sig.astype(jnp.bfloat16),
                 preferred_element_type=jnp.float32) + b_sig
    ht = jnp.dot(xb, w_tanh.astype(jnp.bfloat16),
                 preferred_element_type=jnp.float32) + b_tanh
    out = jnp.sum(jax.nn.sigmoid(hs) * jnp.tanh(ht), axis=1)
    if activation_tanh:
        out = jnp.tanh(out)
    return out


if __name__ == "__main__":
    key = jax.random.PRNGKey(0)

    # Small shapes consistent with the module:
    B = 2              # batch
    N = 8              # number of graph nodes (summed over in forward)
    in_features = 32
    node_dim = 32
    out_features = 32
    F = in_features + node_dim

    k_x, k_s, k_t = jax.random.split(key, 3)
    x = jax.random.normal(k_x, (B, N, F), jnp.float32)
    w_sig, b_sig = _init_linear(k_s, F, out_features)
    w_tanh, b_tanh = _init_linear(k_t, F, out_features)

    out = graph_aggregation(x, w_sig, b_sig, w_tanh, b_tanh,
                            activation_tanh=True)
    out = jax.block_until_ready(out)

    ref_bf16 = _reference_bf16(x, w_sig, b_sig, w_tanh, b_tanh, activation_tanh=True)
    ref_f32 = _reference_f32(x, w_sig, b_sig, w_tanh, b_tanh, activation_tanh=True)

    assert out.shape == (B, out_features)
    # Tight check vs. a reference that mirrors the kernel's bf16-matmul/f32-accum precision.
    assert jnp.allclose(out, ref_bf16, atol=2e-3, rtol=2e-3), "mismatch vs bf16 reference"
    # Loose check vs. the exact f32 (PyTorch-semantics) reference.
    assert jnp.allclose(out, ref_f32, atol=5e-2, rtol=5e-2), "mismatch vs f32 reference"

    print("KERNEL_OK")
</pallas_src>

<mosaic_0001>
module attributes {stable_mosaic.version = 11 : i64} {
  func.func @_graph_agg_kernel(%arg0: i32, %arg1: memref<16x64xf32, #tpu.memory_space<vmem>>, %arg2: memref<64x128xbf16, #tpu.memory_space<vmem>>, %arg3: memref<1x128xf32, #tpu.memory_space<vmem>>, %arg4: memref<2x32xf32, #tpu.memory_space<vmem>>) attributes {dimension_semantics = [#tpu.dimension_semantics<parallel>], iteration_bounds = array<i64: 1>, scalar_prefetch = 0 : i64, scratch_operands = 0 : i64, tpu.core_type = #tpu.core_type<tc>, window_params = [{transform_indices = @transform_0, window_bounds = array<i64: 16, 64>}, {pipeline_mode = #tpu.pipeline_mode<synchronous>, transform_indices = @transform_1, window_bounds = array<i64: 64, 128>}, {pipeline_mode = #tpu.pipeline_mode<synchronous>, transform_indices = @transform_2, window_bounds = array<i64: 1, 128>}, {transform_indices = @transform_3, window_bounds = array<i64: 2, 32>}]} {
    %c0 = arith.constant 0 : index
    %c0_0 = arith.constant 0 : index
    %0 = vector.load %arg1[%c0, %c0_0] : memref<16x64xf32, #tpu.memory_space<vmem>>, vector<16x64xf32>
    %1 = arith.truncf %0 : vector<16x64xf32> to vector<16x64xbf16>
    %c0_1 = arith.constant 0 : index
    %c0_2 = arith.constant 0 : index
    %2 = vector.load %arg2[%c0_1, %c0_2] : memref<64x128xbf16, #tpu.memory_space<vmem>>, vector<64x128xbf16>
    %cst = arith.constant dense<0.000000e+00> : vector<16x128xf32>
    %3 = tpu.matmul %1, %2, %cst {dimension_numbers = #tpu.dot_dimension_numbers<[1], [0], [0], [1], [0, 0, 1, 1], [], []>} : vector<16x64xbf16>, vector<64x128xbf16>, vector<16x128xf32> -> vector<16x128xf32>
    %c0_3 = arith.constant 0 : index
    %c0_4 = arith.constant 0 : index
    %4 = vector.load %arg3[%c0_3, %c0_4] : memref<1x128xf32, #tpu.memory_space<vmem>>, vector<1x128xf32>
    %5 = vector.broadcast %4 : vector<1x128xf32> to vector<16x128xf32>
    %6 = arith.addf %3, %5 : vector<16x128xf32>
    %7 = arith.negf %6 : vector<16x128xf32>
    %8 = math.exp %7 : vector<16x128xf32>
    %cst_5 = arith.constant 1.000000e+00 : f32
    %9 = vector.broadcast %cst_5 : f32 to vector<16x128xf32>
    %10 = arith.addf %9, %8 : vector<16x128xf32>
    %11 = arith.divf %9, %10 : vector<16x128xf32>
    %12 = vector.extract_strided_slice %11 {offsets = [0, 0], sizes = [16, 32], strides = [1, 1]} : vector<16x128xf32> to vector<16x32xf32>
    %13 = vector.extract_strided_slice %11 {offsets = [0, 32], sizes = [16, 32], strides = [1, 1]} : vector<16x128xf32> to vector<16x32xf32>
    %cst_6 = arith.constant 2.000000e+00 : f32
    %14 = vector.broadcast %cst_6 : f32 to vector<16x32xf32>
    %15 = arith.mulf %14, %13 : vector<16x32xf32>
    %cst_7 = arith.constant 1.000000e+00 : f32
    %16 = vector.broadcast %cst_7 : f32 to vector<16x32xf32>
    %17 = arith.subf %15, %16 : vector<16x32xf32>
    %18 = arith.mulf %12, %17 : vector<16x32xf32>
    %19 = vector.shape_cast %18 : vector<16x32xf32> to vector<2x8x32xf32>
    %cst_8 = arith.constant dense<0.000000e+00> : vector<2x32xf32>
    %20 = vector.multi_reduction <add>, %19, %cst_8 [1] : vector<2x8x32xf32> to vector<2x32xf32>
    %21 = math.tanh %20 : vector<2x32xf32>
    %c0_9 = arith.constant 0 : index
    %c0_10 = arith.constant 0 : index
    %22 = vector.load %arg4[%c0_9, %c0_10] : memref<2x32xf32, #tpu.memory_space<vmem>>, vector<2x32xf32>
    tpu.vector_store %arg4[%c0_9, %c0_10], %21 {strides = array<i32>} : memref<2x32xf32, #tpu.memory_space<vmem>>, vector<2x32xf32>,
    return
  }
  func.func @transform_0(%arg0: i32) -> (i32, i32) {
    %c0_i32 = arith.constant 0 : i32
    %c0_i32_0 = arith.constant 0 : i32
    return %arg0, %c0_i32 : i32, i32
  }
  func.func @transform_1(%arg0: i32) -> (i32, i32) {
    %c0_i32 = arith.constant 0 : i32
    %c0_i32_0 = arith.constant 0 : i32
    %c0_i32_1 = arith.constant 0 : i32
    return %c0_i32, %c0_i32_0 : i32, i32
  }
  func.func @transform_2(%arg0: i32) -> (i32, i32) {
    %c0_i32 = arith.constant 0 : i32
    %c0_i32_0 = arith.constant 0 : i32
    %c0_i32_1 = arith.constant 0 : i32
    return %c0_i32, %c0_i32_0 : i32, i32
  }
  func.func @transform_3(%arg0: i32) -> (i32, i32) {
    %c0_i32 = arith.constant 0 : i32
    %c0_i32_0 = arith.constant 0 : i32
    return %arg0, %c0_i32 : i32, i32
  }
}

</mosaic_0001>

<bundles_post_ra>
// kernel: tpu_custom_call.1
= control target key start
LH: loop header
LB: loop body
LE: loop exit
PB: predicated region body
PF: predicated region fallthrough
CT: control target
= control target key end

     0   :  { %8 = vsyncpa [#allocation3], 0  ;;  %s391_s0 = inlined_call_operand.hbm [shape: f32[16,64], index: 0, kind: input, shape index: {}]   ;;  %s392_s1 = inlined_call_operand.hbm [shape: bf16[64,128], index: 1, kind: input, shape index: {}]   ;;  %s393_s2 = inlined_call_operand.vmem [shape: f32[1,128], index: 2, kind: input, shape index: {}]   ;;  %s394_s3 = inlined_call_operand.hbm [shape: f32[2,32], index: 3, kind: output, shape index: {}]  }
   0x1   :  { %9 = vsyncpa [#allocation6], 0 }
   0x2   :  { %10 = vsyncpa [#allocation4], 0  ;;  %s322_s12 = smov [#allocation2]   ;;  %s250_s16 = scalar_lea.hbm %s391_s0, 256 }
   0x3   :  { %s16_s13 = sshll.u32 %s322_s12, 4  ;;  %p251_p0 = scmp.ne.s32.totalorder %s391_s0, %s250_s16  ;;  %s17_s13 = int_to_ptr.vmem [resolvable:$true] %s16_s13 }
   0x4   :  { %p254_p1 = scmp.lt.u32.totalorder %s250_s16, %s391_s0 }
   0x6   :  { %p256_p2 = pnand %p254_p1, %p251_p0 }
   0x8   :  { %259 = shalt.err (!%p256_p2)
}
   0x9   :  { %s260_s21 = scalar_lea.vmem %s17_s13, 256  ;;  %p265_p4 = scmp.lt.s32.totalorder %s17_s13, %s17_s13 }
   0xa   :  { %p261_p3 = scmp.ne.s32.totalorder %s17_s13, %s260_s21  ;;  %p266_p5 = scmp.lt.s32.totalorder %s260_s21, %s260_s21 }
   0xc   :  { %p267_p6 = por %p266_p5, %p265_p4 }
   0xe   :  { %p268_p7 = pnand %p267_p6, %p261_p3 }
  0x10   :  { %271 = shalt.err (!%p268_p7)
}
  0x11   :  { %s323_s22 = smov 128   ;;  %s324_s23 = smov 8  }
  0x12   :  { %22 = dma.hbm_to_vmem [thread:$0]  %s391_s0, 256, %s17_s13, [#allocation3], %s323_s22, %s323_s22, %s324_s23  }
  0x13   :  { %s325_s26 = smov [#allocation5]   ;;  %s272_s30 = scalar_lea.hbm %s392_s1, 512 }
  0x14   :  { %s28_s27 = sshll.u32 %s325_s26, 4  ;;  %p273_p8 = scmp.ne.s32.totalorder %s392_s1, %s272_s30  ;;  %s29_s27 = int_to_ptr.vmem [resolvable:$true] %s28_s27 }
  0x15   :  { %p276_p9 = scmp.lt.u32.totalorder %s272_s30, %s392_s1 }
  0x17   :  { %p278_p10 = pnand %p276_p9, %p273_p8 }
  0x19   :  { %281 = shalt.err (!%p278_p10)
}
  0x1a   :  { %s282_s8 = scalar_lea.vmem %s29_s27, 512  ;;  %p287_p12 = scmp.lt.s32.totalorder %s29_s27, %s29_s27 }
  0x1b   :  { %p283_p11 = scmp.ne.s32.totalorder %s29_s27, %s282_s8  ;;  %p288_p13 = scmp.lt.s32.totalorder %s282_s8, %s282_s8 }
  0x1d   :  { %p289_p0 = por %p288_p13, %p287_p12 }
  0x1f   :  { %p290_p1 = pnand %p289_p0, %p283_p11 }
  0x21   :  { %293 = shalt.err (!%p290_p1)
}
  0x22   :  { %s326_s0 = smov 64   ;;  %s327_s9 = smov 4  }
  0x23   :  { %34 = dma.hbm_to_vmem [thread:$0]  %s392_s1, 512, %s29_s27, [#allocation6], %s326_s0, %s326_s0, %s327_s9  }
  0x24   :  { %316 = dma.done.wait [#allocation3], 256  }
  0x25   :  { %317 = vsyncadd [#allocation3], 4294967040 }
  0x26   :  { %318 = dma.done.wait [#allocation6], 512  }
  0x27   :  { %319 = vsyncadd [#allocation6], 4294966784  ;;  %v328_v0 = vmov 0.0   ;;  %vm329_vm0 = vmmov 0   ;;  %v234_v1 = vld [vmem:[#allocation5] sm:$0xff]   ;;  %v235_v2 = vld [vmem:[#allocation5 + $0x8] sm:$0xff]  }
  0x28   :  { %212 = vmatprep.subr.bf16.mxu0 %v328_v0  ;;  %220 = vmatprep.mubr.msk.bf16.mxu0 %vm329_vm0, %v328_v0  ;;  %v236_v3 = vld [vmem:[#allocation5 + $0x10] sm:$0xff]   ;;  %v237_v4 = vld [vmem:[#allocation5 + $0x18] sm:$0xff]   ;;  %vm86_vm1 = vcmask 523264   ;;  %vm157_vm2 = vcmask 261120   ;;  %s331_s13 = smov [#allocation7]   ;;  %vm176_vm3 = vcmask 1041409  }
  0x29   :  { %213 = vmatpush3.bf16.msra.mxu0 %v234_v1  ;;  %v44_v5 = vld [vmem:[#allocation2] sm:$0xff]  ;;  %v45_v6 = vld [vmem:[#allocation2 + $0x8] sm:$0xff]  ;;  %s187_s14 = sshll.u32 %s331_s13, 4  ;;  %vm179_vm4 = vcmask 254976   ;;  %s188_s14 = int_to_ptr.vmem [resolvable:$true] %s187_s14 }
  0x2a   :  { %214 = vmatprep.subr.bf16.mxu0 %v328_v0  ;;  %v46_v7 = vpack.c.bf16 %v45_v6, %v44_v5  ;;  %v197_v8 = vld [vmem:[%s393_s2] ss:$0 sm:$0xff]  ;;  %s330_s2 = smov 96   ;;  %s294_s15 = scalar_lea.vmem %s188_s14, 32 }
  0x2b   :  { %p295_p2 = scmp.ne.s32.totalorder %s188_s14, %s294_s15  ;;  %p299_p3 = scmp.lt.s32.totalorder %s188_s14, %s188_s14 }
  0x2c   :  { %p300_p4 = scmp.lt.s32.totalorder %s294_s15, %s294_s15 }
  0x2d   :  { %215 = vmatpush3.bf16.msra.mxu0 %v235_v2 }
  0x2e   :  { %216 = vmatprep.subr.bf16.mxu0 %v328_v0  ;;  %p301_p5 = por %p300_p4, %p299_p3 }
  0x30   :  { %p302_p6 = pnand %p301_p5, %p295_p2 }
  0x31   :  { %217 = vmatpush3.bf16.msra.mxu0 %v236_v3 }
  0x32   :  { %218 = vmatprep.subr.bf16.mxu0 %v328_v0 }
  0x35   :  { %219 = vmatpush3.bf16.msra.mxu0 %v237_v4 }
  0x38   :  { %221 = vmatmul.mubr.msk.bf16.vlgmr.msra.gmra.mrb[0].mxu0 %vm86_vm1, %v46_v7 }
 0x10b   :  { %v124_v9 = vpop.f32.mrb[0].mxu0 }
 0x10c   :  { %v125_v10 = vadd.f32 %v197_v8, %v124_v9  ;;  %v222_v11 = vpop.f32.mrb[1].mxu0 }
 0x10d   :  { %v127_v12 = vpop.f32.mrb[2].mxu0 }
 0x10e   :  { %v203_v13 = vmul.f32 -1.442695, %v125_v10  ;;  %v128_v14 = vadd.f32 %v197_v8, %v127_v12  ;;  %v223_v15 = vpop.f32.mrb[3].mxu0 }
 0x110   :  { %238 = vpow2.f32 %v203_v13  ;;  %v204_v16 = vmul.f32 -1.442695, %v128_v14 }
 0x112   :  { %240 = vpow2.f32 %v204_v16 }
 0x11a   :  { %v239_v17 = vpop.eup %238 }
 0x11b   :  { %v137_v18 = vadd.f32 1.0, %v239_v17 }
 0x11c   :  { %v241_v19 = vpop.eup %240 }
 0x11d   :  { %242 = vrcp.f32 %v137_v18  ;;  %v138_v20 = vadd.f32 1.0, %v241_v19 }
 0x11f   :  { %244 = vrcp.f32 %v138_v20 }
 0x127   :  { %v243_v21 = vpop.eup %242 }
 0x128   :  { %v143_v22 = vmul.f32 2.0, %v243_v21 }
 0x129   :  { %v245_v23 = vpop.eup %244 }
 0x12a   :  { %v205_v24 = vadd.f32 -1.0, %v143_v22  ;;  %v144_v25 = vmul.f32 2.0, %v245_v23 }
 0x12c   :  { %149 = vrot.lane.b32.xlu0 %v205_v24, %s330_s2  ;;  %v206_v26 = vadd.f32 -1.0, %v144_v25 }
 0x130   :  { %151 = vrot.lane.b32.xlu0 %v206_v26, %s330_s2 }
 0x19e   :  { %v150_v27 = vpop.permute.xlu0 %149 }
 0x19f   :  { %v155_v28 = vmul.f32 %v243_v21, %v150_v27 }
 0x1a1   :  { %v158_v29 = vsel %vm157_vm2, %v155_v28, 0.0 }
 0x1a2   :  { %v159_v30 = vrot.slane %v158_v29, 4  ;;  %v152_v31 = vpop.permute.xlu0 %151 }
 0x1a3   :  { %v156_v32 = vmul.f32 %v245_v23, %v152_v31 }
 0x1a4   :  { %v160_v33 = vadd.f32 %v159_v30, %v158_v29 }
 0x1a5   :  { %v165_v34 = vsel %vm157_vm2, %v156_v32, 0.0 }
 0x1a6   :  { %v161_v35 = vrot.slane %v160_v33, 2  ;;  %v166_v36 = vrot.slane %v165_v34, 4 }
 0x1a8   :  { %v162_v37 = vadd.f32 %v161_v35, %v160_v33  ;;  %v167_v38 = vadd.f32 %v166_v36, %v165_v34 }
 0x1aa   :  { %v163_v39 = vrot.slane %v162_v37, 1  ;;  %v168_v40 = vrot.slane %v167_v38, 2 }
 0x1ac   :  { %v169_v41 = vadd.f32 %v168_v40, %v167_v38  ;;  %v164_v42 = vadd.f32 %v163_v39, %v162_v37 }
 0x1ae   :  { %v170_v43 = vrot.slane %v169_v41, 1  ;;  %246 = vtanh.f32 %v164_v42 }
 0x1b0   :  { %v171_v44 = vadd.f32 %v170_v43, %v169_v41 }
 0x1b2   :  { %248 = vtanh.f32 %v171_v44 }
 0x1b8   :  { %v247_v45 = vpop.eup %246 }
 0x1bc   :  { %v249_v46 = vpop.eup %248 }
 0x1bd   :  { %v177_v47 = vsel %vm176_vm3, %v249_v46, %v247_v45 }
 0x1be   :  { %180 = vst.msk [vmem:[#allocation7] sm:$0x3] %vm179_vm4, %v177_v47 }
 0x1bf   :  { %305 = shalt.err (!%p302_p6)
}
 0x1c0   :  { %s306_s18 = scalar_lea.hbm %s394_s3, 32 }
 0x1c1   :  { %p307_p7 = scmp.ne.s32.totalorder %s394_s3, %s306_s18  ;;  %p310_p8 = scmp.lt.u32.totalorder %s306_s18, %s394_s3 }
 0x1c3   :  { %p312_p9 = pnand %p310_p8, %p307_p7 }
 0x1c5   :  { %315 = shalt.err (!%p312_p9)
}
 0x1c6   :  { %190 = dma.vmem_to_hbm [thread:$0]  %s188_s14, 32, %s394_s3, [#allocation4]  }
 0x1c7   :  { %320 = dma.done.wait [#allocation4], 32  }
 0x1c8   :  { %321 = vsyncadd [#allocation4], 4294967264 }
 0x1c9   :  { %194 = vsyncpa [#allocation3], 1 }
 0x1ca   :  { %195 = vsyncpa [#allocation6], 1 }
 0x1cb   :  { %196 = vsyncpa [#allocation4], 1 }

</bundles_post_ra>
